<compile_context>
chip_gen: v7x
topology: tpu7x:2x2x1
jax: 0.10.0
libtpu: 0.0.40
codegen_flags: <defaults>
</compile_context>

<pallas_src>
import functools
import math

import jax
import jax.numpy as jnp
from jax.experimental import pallas as pl
from jax.experimental.pallas import tpu as pltpu


def _focus_1x1_kernel(xs_ref, w_ref, b_ref, o_ref):
    """Fused 1x1 conv over the 4C space-to-depth channels + folded BN + SiLU.

    Block shapes:
      xs : (1, 4C, TP)   one batch element, all concat channels, TP out pixels
      w  : (OUT, 4C)     BN-scale-folded 1x1 conv weight (single K=4C matmul)
      b  : (OUT, 1)      folded BN bias
      o  : (1, OUT, TP)
    """
    y = jnp.dot(w_ref[...], xs_ref[0], preferred_element_type=jnp.float32)
    y = y + b_ref[...]
    # Numerically safe SiLU: sigmoid via exp(-|y|) never overflows; the VPU/EUP
    # epilogue is hidden under the HBM-bound DMA stream.
    t = jnp.exp(-jnp.abs(y))
    sig = jnp.where(y >= 0, 1.0, t) / (1.0 + t)
    o_ref[0] = (y * sig).astype(o_ref.dtype)


def _pick_tile_p(p: int) -> int:
    """Largest lane-dense spatial tile (multiple of 128) that divides P."""
    for cand in (8192, 4096, 2048, 1024, 512, 256, 128):
        if p % cand == 0:
            return cand
    # TODO(synk): P not a multiple of 128 falls back to a single (possibly
    # masked-store) block; pad-and-mask would be faster for large odd planes.
    return p


@functools.partial(jax.jit, static_argnames=("tile_p", "out_dtype"))
def focus_forward(x, w, scale, bias, *, tile_p=None, out_dtype=None):
    """Focus forward pass (1x1 conv, stride 1) with a fused Pallas kernel.

    x:     (N, C, H, W)   NCHW input
    w:     (OUT, 4*C)     1x1 conv weight (input channels in concat order
                          TL, BL, TR, BR — same as torch)
    scale: (OUT,)         folded BN scale = gamma / sqrt(var + eps)
    bias:  (OUT,)         folded BN bias  = beta - mean * scale
    returns (N, OUT, H//2, W//2) in `out_dtype` (defaults to x.dtype)
    """
    n, c, h, wd = x.shape
    assert h % 2 == 0 and wd % 2 == 0, "Focus needs even spatial dims"
    outs, c4 = w.shape
    assert c4 == 4 * c
    h2, w2 = h // 2, wd // 2
    p = h2 * w2
    if out_dtype is None:
        out_dtype = x.dtype

    # Space-to-depth as ONE concatenated (N, 4C, P) tensor, produced by a single
    # fused XLA transpose pass.  Channel order matches torch.cat((TL,BL,TR,BR)):
    # channel index = (2*s + r)*C + c  for offsets (r, s) in H, W.
    x6 = x.reshape(n, c, h2, 2, w2, 2)                      # (n,c,i,r,j,s) — free
    xs2d = jnp.transpose(x6, (0, 5, 3, 1, 2, 4)).reshape(n, c4, p)

    # Fold the inference BatchNorm scale into the conv weight; match dtypes to x
    # so the MXU sees a homogeneous-dtype matmul (f32 accumulate regardless).
    w_eff = (w * scale[:, None]).astype(x.dtype)
    b2 = bias.reshape(outs, 1).astype(jnp.float32)

    if tile_p is None:
        tile_p = _pick_tile_p(p)
    assert p % tile_p == 0

    grid = (n, p // tile_p)

    out_flat = pl.pallas_call(
        _focus_1x1_kernel,
        out_shape=jax.ShapeDtypeStruct((n, outs, p), out_dtype),
        grid_spec=pltpu.PrefetchScalarGridSpec(
            num_scalar_prefetch=0,
            grid=grid,
            in_specs=[
                pl.BlockSpec((1, c4, tile_p), lambda b, j: (b, 0, j)),  # s2d input
                pl.BlockSpec((outs, c4), lambda b, j: (0, 0)),          # weight
                pl.BlockSpec((outs, 1), lambda b, j: (0, 0)),           # bn bias
            ],
            out_specs=pl.BlockSpec((1, outs, tile_p), lambda b, j: (b, 0, j)),
        ),
        compiler_params=pltpu.CompilerParams(
            dimension_semantics=("parallel", "parallel")),
    )(xs2d, w_eff, b2)

    return out_flat.reshape(n, outs, h2, w2)


class Focus:
    """JAX/Pallas equivalent of the PyTorch Focus module (inference mode)."""

    def __init__(self, ins: int, outs: int, kernel: int = 1, stride: int = 1,
                 act: str = "silu", *, key) -> None:
        assert kernel == 1 and stride == 1, \
            "Pallas path implements the module's default 1x1 / stride-1 conv"
        assert act == "silu"
        k1, k2, k3 = jax.random.split(key, 3)
        fan_in = 4 * ins
        # Conv2d(4*ins, outs, 1, bias=False) weight, flattened to (outs, 4*ins).
        self.w = jax.random.normal(k1, (outs, 4 * ins), jnp.float32) / math.sqrt(fan_in)
        # BatchNorm2d(outs) parameters / running stats (inference mode).
        self.gamma = 1.0 + 0.1 * jax.random.normal(k2, (outs,), jnp.float32)
        self.beta = 0.1 * jax.random.normal(k3, (outs,), jnp.float32)
        self.mean = jnp.zeros((outs,), jnp.float32)
        self.var = jnp.ones((outs,), jnp.float32)
        self.eps = 1e-5

    def __call__(self, x, *, out_dtype=None):
        scale = self.gamma / jnp.sqrt(self.var + self.eps)
        bias = self.beta - self.mean * scale
        return focus_forward(x, self.w, scale, bias, out_dtype=out_dtype)


def focus_reference(x, w, gamma, beta, mean, var, eps):
    """Pure-JAX reference of the Focus forward (for verification)."""
    tl = x[..., ::2, ::2]
    tr = x[..., ::2, 1::2]
    bl = x[..., 1::2, ::2]
    br = x[..., 1::2, 1::2]
    xc = jnp.concatenate([tl, bl, tr, br], axis=1)
    y = jnp.einsum("ok,nkhw->nohw", w, xc)
    scale = gamma / jnp.sqrt(var + eps)
    bias = beta - mean * scale
    y = y * scale[None, :, None, None] + bias[None, :, None, None]
    return y * jax.nn.sigmoid(y)


if __name__ == "__main__":
    key = jax.random.PRNGKey(0)
    kx, km = jax.random.split(key)

    # Small shapes consistent with a Focus stem: NCHW input, even spatial dims.
    # H = W = 32 -> output spatial plane P = 16*16 = 256 (lane-dense, 2x128).
    N, C, H, W = 2, 4, 32, 32
    OUTS = 32

    x = jax.random.normal(kx, (N, C, H, W), dtype=jnp.float32)
    mod = Focus(ins=C, outs=OUTS, kernel=1, stride=1, act="silu", key=km)

    out = jax.block_until_ready(mod(x))
    ref = focus_reference(x, mod.w, mod.gamma, mod.beta, mod.mean, mod.var, mod.eps)

    assert out.shape == ref.shape == (N, OUTS, H // 2, W // 2), (out.shape, ref.shape)
    assert out.dtype == ref.dtype == jnp.float32
    max_err = float(jnp.max(jnp.abs(out - ref)))
    assert max_err < 1e-4, f"max abs error {max_err}"

    # Traffic-optimized bf16-output path (output is the dominant HBM stream);
    # compute stays f32 in-kernel, only the store narrows.
    out_bf16 = jax.block_until_ready(mod(x, out_dtype=jnp.bfloat16))
    assert out_bf16.shape == ref.shape
    assert out_bf16.dtype == jnp.bfloat16
    max_err_bf16 = float(jnp.max(jnp.abs(out_bf16.astype(jnp.float32) - ref)))
    assert max_err_bf16 < 3e-2, f"bf16 max abs error {max_err_bf16}"

    print("KERNEL_OK")
</pallas_src>

<mosaic_0001>
module attributes {stable_mosaic.version = 11 : i64} {
  func.func @_focus_1x1_kernel(%arg0: i32, %arg1: i32, %arg2: memref<1x16x256xf32, #tpu.memory_space<vmem>>, %arg3: memref<32x16xf32, #tpu.memory_space<vmem>>, %arg4: memref<32x1xf32, #tpu.memory_space<vmem>>, %arg5: memref<1x32x256xf32, #tpu.memory_space<vmem>>) attributes {dimension_semantics = [#tpu.dimension_semantics<parallel>, #tpu.dimension_semantics<parallel>], iteration_bounds = array<i64: 2, 1>, scalar_prefetch = 0 : i64, scratch_operands = 0 : i64, tpu.core_type = #tpu.core_type<tc>, window_params = [{transform_indices = @transform_0, window_bounds = array<i64: 1, 16, 256>}, {pipeline_mode = #tpu.pipeline_mode<synchronous>, transform_indices = @transform_1, window_bounds = array<i64: 32, 16>}, {pipeline_mode = #tpu.pipeline_mode<synchronous>, transform_indices = @transform_2, window_bounds = array<i64: 32, 1>}, {transform_indices = @transform_3, window_bounds = array<i64: 1, 32, 256>}]} {
    %c0 = arith.constant 0 : index
    %c0_0 = arith.constant 0 : index
    %0 = vector.load %arg3[%c0, %c0_0] : memref<32x16xf32, #tpu.memory_space<vmem>>, vector<32x16xf32>
    %c0_1 = arith.constant 0 : index
    %c0_2 = arith.constant 0 : index
    %c0_3 = arith.constant 0 : index
    %1 = vector.load %arg2[%c0_1, %c0_2, %c0_3] : memref<1x16x256xf32, #tpu.memory_space<vmem>>, vector<1x16x256xf32>
    %2 = vector.shape_cast %1 : vector<1x16x256xf32> to vector<16x256xf32>
    %cst = arith.constant dense<0.000000e+00> : vector<32x256xf32>
    %3 = tpu.matmul %0, %2, %cst {dimension_numbers = #tpu.dot_dimension_numbers<[1], [0], [0], [1], [0, 0, 1, 1], [], []>} : vector<32x16xf32>, vector<16x256xf32>, vector<32x256xf32> -> vector<32x256xf32>
    %c0_4 = arith.constant 0 : index
    %c0_5 = arith.constant 0 : index
    %4 = vector.load %arg4[%c0_4, %c0_5] : memref<32x1xf32, #tpu.memory_space<vmem>>, vector<32x1xf32>
    %5 = vector.broadcast %4 : vector<32x1xf32> to vector<32x256xf32>
    %6 = arith.addf %3, %5 : vector<32x256xf32>
    %7 = math.absf %6 : vector<32x256xf32>
    %cst_6 = arith.constant 0.000000e+00 : f32
    %8 = vector.broadcast %cst_6 : f32 to vector<32x256xf32>
    %9 = arith.subf %8, %7 : vector<32x256xf32>
    %10 = math.exp %9 : vector<32x256xf32>
    %cst_7 = arith.constant 0.000000e+00 : f32
    %11 = vector.broadcast %cst_7 : f32 to vector<32x256xf32>
    %12 = arith.cmpf oge, %6, %11 : vector<32x256xf32>
    %cst_8 = arith.constant 1.000000e+00 : f32
    %13 = vector.broadcast %cst_8 : f32 to vector<32x256xf32>
    %14 = arith.select %12, %13, %10 : vector<32x256xi1>, vector<32x256xf32>
    %cst_9 = arith.constant 1.000000e+00 : f32
    %15 = vector.broadcast %cst_9 : f32 to vector<32x256xf32>
    %16 = arith.addf %15, %10 : vector<32x256xf32>
    %17 = arith.divf %14, %16 : vector<32x256xf32>
    %18 = arith.mulf %6, %17 : vector<32x256xf32>
    %c0_10 = arith.constant 0 : index
    %c0_11 = arith.constant 0 : index
    %c0_12 = arith.constant 0 : index
    %19 = vector.load %arg5[%c0_10, %c0_11, %c0_12] : memref<1x32x256xf32, #tpu.memory_space<vmem>>, vector<1x32x256xf32>
    %20 = vector.shape_cast %19 : vector<1x32x256xf32> to vector<32x256xf32>
    %21 = vector.shape_cast %18 : vector<32x256xf32> to vector<1x32x256xf32>
    tpu.vector_store %arg5[%c0_10, %c0_11, %c0_12], %21 {strides = array<i32>} : memref<1x32x256xf32, #tpu.memory_space<vmem>>, vector<1x32x256xf32>,
    return
  }
  func.func @transform_0(%arg0: i32, %arg1: i32) -> (i32, i32, i32) {
    %c0_i32 = arith.constant 0 : i32
    %c0_i32_0 = arith.constant 0 : i32
    return %arg0, %c0_i32, %arg1 : i32, i32, i32
  }
  func.func @transform_1(%arg0: i32, %arg1: i32) -> (i32, i32) {
    %c0_i32 = arith.constant 0 : i32
    %c0_i32_0 = arith.constant 0 : i32
    %c0_i32_1 = arith.constant 0 : i32
    return %c0_i32, %c0_i32_0 : i32, i32
  }
  func.func @transform_2(%arg0: i32, %arg1: i32) -> (i32, i32) {
    %c0_i32 = arith.constant 0 : i32
    %c0_i32_0 = arith.constant 0 : i32
    %c0_i32_1 = arith.constant 0 : i32
    return %c0_i32, %c0_i32_0 : i32, i32
  }
  func.func @transform_3(%arg0: i32, %arg1: i32) -> (i32, i32, i32) {
    %c0_i32 = arith.constant 0 : i32
    %c0_i32_0 = arith.constant 0 : i32
    return %arg0, %c0_i32, %arg1 : i32, i32, i32
  }
}

</mosaic_0001>

<bundles_post_ra>
// kernel: focus_forward.1
= control target key start
LH: loop header
LB: loop body
LE: loop exit
PB: predicated region body
PF: predicated region fallthrough
CT: control target
= control target key end

     0   :  { %s648_s12 = smov 0   ;;  %s650_s13 = smov 0   ;;  %s759_s0 = inlined_call_operand.vmem [shape: f32[2,16,256], index: 0, kind: input, shape index: {}]   ;;  %s760_s1 = inlined_call_operand.vmem [shape: f32[32,16], index: 1, kind: input, shape index: {}]   ;;  %s761_s2 = inlined_call_operand.vmem [shape: f32[32,1], index: 2, kind: input, shape index: {}]   ;;  %s762_s3 = inlined_call_operand.vmem [shape: f32[2,32,256], index: 3, kind: output, shape index: {}]  }
   0x1   :  { %s652_s14 = smov 0  }
   0x2 LB: > { %s25_s15 = sadd.s32 1, %s620_s13  ;;  %p523_p0 = scmp.ge.s32.totalorder %s624_s14, 1  ;;  %s624_s14 = sphi %s652_s14, %s13_s14   ;;  %s620_s13 = sphi %s650_s13, %s764_s13   ;;  %s616_s12 = sphi %s648_s12, %s763_s12  }
   0x3   : > { %p27_p1 = scmp.ge.s32.totalorder %s25_s15, 2  ;;  %p158_p2 = scmp.lt.s32.totalorder %s624_s14, 3 }
   0x5   : > { %s766_s15 = smov (%p27_p1, %s25_s15), 0  ;;  %p159_p3 = pnand %p523_p0, %p158_p2 }
   0x6   : > { %p191_p4 = scmp.lt.s32.totalorder (!%p159_p3), %s616_s12, 1  ;;  %v626_v0 = vmov (!%p159_p3), 0.0   ;;  %v220_v1 = vld [vmem:[%s761_s2 + $0x10] sm:$0xff] (!%p159_p3)  ;;  %v218_v2 = vld [vmem:[%s761_s2] sm:$0xff] (!%p159_p3)  ;;  %v627_v3 = vmov (!%p159_p3), 0   ;;  %v221_v4 = vld [vmem:[%s761_s2 + $0x18] sm:$0xff] (!%p159_p3) }
   0x7   : > { %162 = sbr.rel (%p159_p3) target bundleno = 280 (0x118), region = 32  ;;  %319 = vmatprep.mubr.f32.mxu0 (!%p159_p3), %v626_v0  ;;  %331 = vmatprep.mubr.f32.mxu1 (!%p159_p3), %v626_v0  ;;  %v219_v5 = vld [vmem:[%s761_s2 + $0x8] sm:$0xff] (!%p159_p3)  ;;  %v210_v12 = vld [vmem:[%s760_s1] sm:$0xff] (!%p159_p3)  ;;  %vm242_vm0 = vcmask (!%p159_p3), 130048   ;;  %v212_v13 = vld [vmem:[%s760_s1 + $0x10] sm:$0xff] (!%p159_p3) }
   0x8   : > { %569 = vset.pattern.permute.xlu1 (!%p159_p3), %v627_v3  ;;  %568 = vset.pattern.permute.xlu0 (!%p159_p3), %v627_v3  ;;  %v211_v14 = vld [vmem:[%s760_s1 + $0x8] sm:$0xff] (!%p159_p3)  ;;  %v213_v15 = vld [vmem:[%s760_s1 + $0x18] sm:$0xff] (!%p159_p3) }
   0x9   : > { %234 = vperm.xlu1 (!%p159_p3), %569, %v220_v1   ;;  %224 = vperm.xlu0 (!%p159_p3), %568, %v218_v2  }
   0xd   : > { %239 = vperm.xlu1 (!%p159_p3), %569, %v221_v4   ;;  %229 = vperm.xlu0 (!%p159_p3), %568, %v219_v5  }
   0xe   : > { %s768_s12 = smov (!%p191_p4, %s616_s12), 1 }
   0xf   : > { %s534_s20 = sshll.u32 %s768_s12, 5  ;;  %s535_s9 = sshll.u32 %s768_s12, 6 }
  0x10   : > { %s198_s27 = scalar_lea.vmem %s759_s0, %s534_s20  ;;  %s727_s16 = scalar_lea.vmem %s762_s3, %s535_s9 }
  0x11   : > { %v215_v6 = vld [vmem:[%s198_s27 + $0x8] sm:$0xff]  ;;  %v217_v7 = vld [vmem:[%s198_s27 + $0x18] sm:$0xff]  ;;  %v214_v8 = vld [vmem:[%s198_s27] sm:$0xff] }
  0x12   : > { %v536_v9 = vpack.c.bf16 %v217_v7, %v215_v6  ;;  %v216_v10 = vld [vmem:[%s198_s27 + $0x10] sm:$0xff] }
  0x13   : > { %v538_v11 = vpack.c.bf16 %v216_v10, %v214_v8 }
  0x14   : > { %537 = vmatprep.subr.bf16.mxu0 %v536_v9  ;;  %540 = vmatprep.subr.bf16.mxu1 %v536_v9 }
  0x15   : > { %539 = vmatpush1.bf16.msra.mxu0 %v538_v11  ;;  %541 = vmatpush1.bf16.msra.mxu1 %v538_v11 }
  0x18   : > { %528 = vmatmul.mubr.msk.f32.vlgmr.msra.gmra.mrb[0].mxu0 %vm242_vm0, %v210_v12  ;;  %530 = vmatmul.mubr.msk.f32.vlgmr.msra.gmra.mrb[0].mxu1 %vm242_vm0, %v212_v13 }
  0x19   : > { %325 = vmatprep.mubr.f32.mxu0 %v626_v0  ;;  %337 = vmatprep.mubr.f32.mxu1 %v626_v0 }
  0x1c   : > { %529 = vmatmul.mubr.msk.f32.gmra.mrb[2].mxu0 %vm242_vm0, %v211_v14  ;;  %531 = vmatmul.mubr.msk.f32.gmra.mrb[2].mxu1 %vm242_vm0, %v213_v15 }
  0x88   : > { %v235_v16 = vpop.permute.xlu1 %234  ;;  %v225_v17 = vpop.permute.xlu0 %224 }
  0x8c   : > { %v240_v28 = vpop.permute.xlu1 %239  ;;  %v230_v29 = vpop.permute.xlu0 %229 }
  0xeb   : > { %v321_v18 = vpop.f32.mrb[0].mxu0  ;;  %v333_v19 = vpop.f32.mrb[0].mxu1 }
  0xec   : > { %v696_v20 = vadd.f32 %v321_v18, %v225_v17  ;;  %v698_v21 = vadd.f32 %v333_v19, %v235_v16  ;;  %v323_v22 = vpop.f32.mrb[1].mxu0  ;;  %v335_v23 = vpop.f32.mrb[1].mxu1 }
  0xed   : > { %v700_v24 = vadd.f32 %v323_v22, %v225_v17  ;;  %v702_v25 = vadd.f32 %v335_v23, %v235_v16 }
  0xee   : > { %v344_v26 = vand.u32 2147483647, %v696_v20  ;;  %v348_v27 = vand.u32 2147483647, %v698_v21  ;;  %vm376_vm1 = vcmp.ge.f32.partialorder %v696_v20, 0.0  ;;  %vm380_vm2 = vcmp.ge.f32.partialorder %v698_v21, 0.0 }
  0xef   : > { %v345_v30 = vand.u32 2147483647, %v700_v24  ;;  %v349_v31 = vand.u32 2147483647, %v702_v25  ;;  %v327_v34 = vpop.f32.mrb[2].mxu0  ;;  %v339_v35 = vpop.f32.mrb[2].mxu1 }
  0xf0   : > { %v352_v32 = vsub.f32 0.0, %v344_v26  ;;  %v356_v33 = vsub.f32 0.0, %v348_v27  ;;  %v708_v38 = vadd.f32 %v327_v34, %v230_v29  ;;  %v710_v39 = vadd.f32 %v339_v35, %v240_v28  ;;  %v329_v40 = vpop.f32.mrb[3].mxu0  ;;  %v341_v41 = vpop.f32.mrb[3].mxu1 }
  0xf1   : > { %v353_v36 = vsub.f32 0.0, %v345_v30  ;;  %v357_v37 = vsub.f32 0.0, %v349_v31  ;;  %v712_v44 = vadd.f32 %v329_v40, %v230_v29  ;;  %v714_v45 = vadd.f32 %v341_v41, %v240_v28 }
  0xf2   : > { %v360_v42 = vmul.f32 1.442695, %v352_v32  ;;  %v368_v43 = vmul.f32 1.442695, %v356_v33  ;;  %v346_v48 = vand.u32 2147483647, %v708_v38 }
  0xf3   : > { %v362_v46 = vmul.f32 1.442695, %v353_v36  ;;  %v370_v47 = vmul.f32 1.442695, %v357_v37  ;;  %v350_v49 = vand.u32 2147483647, %v710_v39 }
  0xf4   : > { %570 = vpow2.f32 %v360_v42  ;;  %v354_v50 = vsub.f32 0.0, %v346_v48  ;;  %v347_v51 = vand.u32 2147483647, %v712_v44  ;;  %v351_v53 = vand.u32 2147483647, %v714_v45 }
  0xf5   : > { %572 = vpow2.f32 %v368_v43  ;;  %v358_v52 = vsub.f32 0.0, %v350_v49  ;;  %vm377_vm3 = vcmp.ge.f32.partialorder %v700_v24, 0.0  ;;  %vm381_vm4 = vcmp.ge.f32.partialorder %v702_v25, 0.0 }
  0xf6   : > { %574 = vpow2.f32 %v362_v46  ;;  %v364_v54 = vmul.f32 1.442695, %v354_v50  ;;  %v355_v55 = vsub.f32 0.0, %v347_v51  ;;  %v359_v57 = vsub.f32 0.0, %v351_v53 }
  0xf7   : > { %576 = vpow2.f32 %v370_v47  ;;  %v372_v56 = vmul.f32 1.442695, %v358_v52  ;;  %vm378_vm5 = vcmp.ge.f32.partialorder %v708_v38, 0.0  ;;  %vm382_vm6 = vcmp.ge.f32.partialorder %v710_v39, 0.0 }
  0xf8   : > { %578 = vpow2.f32 %v364_v54  ;;  %v366_v58 = vmul.f32 1.442695, %v355_v55  ;;  %v374_v59 = vmul.f32 1.442695, %v359_v57  ;;  %vm379_vm7 = vcmp.ge.f32.partialorder %v712_v44, 0.0 }
  0xf9   : > { %580 = vpow2.f32 %v372_v56  ;;  %vm383_vm8 = vcmp.ge.f32.partialorder %v714_v45, 0.0 }
  0xfa   : > { %582 = vpow2.f32 %v366_v58 }
  0xfb   : > { %584 = vpow2.f32 %v374_v59 }
  0xfe   : > { %v571_v60 = vpop.eup %570 }
  0xff   : > { %v573_v61 = vpop.eup %572  ;;  %v392_v62 = vadd.f32 1.0, %v571_v60  ;;  %v384_v13 = vsel %vm376_vm1, 1.0, %v571_v60 }
 0x100   : > { %v575_v63 = vpop.eup %574  ;;  %v396_v0 = vadd.f32 1.0, %v573_v61  ;;  %v388_v16 = vsel %vm380_vm2, 1.0, %v573_v61 }
 0x101   : > { %v577_v1 = vpop.eup %576  ;;  %586 = vrcp.f32 %v392_v62  ;;  %v393_v2 = vadd.f32 1.0, %v575_v63  ;;  %v385_v19 = vsel %vm377_vm3, 1.0, %v575_v63 }
 0x102   : > { %588 = vrcp.f32 %v396_v0  ;;  %v397_v3 = vadd.f32 1.0, %v577_v1  ;;  %v579_v4 = vpop.eup %578  ;;  %v389_v27 = vsel %vm381_vm4, 1.0, %v577_v1 }
 0x103   : > { %590 = vrcp.f32 %v393_v2  ;;  %v581_v5 = vpop.eup %580  ;;  %v394_v6 = vadd.f32 1.0, %v579_v4  ;;  %v386_v32 = vsel %vm378_vm5, 1.0, %v579_v4 }
 0x104   : > { %592 = vrcp.f32 %v397_v3  ;;  %v583_v7 = vpop.eup %582  ;;  %v398_v8 = vadd.f32 1.0, %v581_v5  ;;  %v390_v35 = vsel %vm382_vm6, 1.0, %v581_v5 }
 0x105   : > { %v585_v9 = vpop.eup %584  ;;  %594 = vrcp.f32 %v394_v6  ;;  %v395_v10 = vadd.f32 1.0, %v583_v7  ;;  %v387_v37 = vsel %vm379_vm7, 1.0, %v583_v7 }
 0x106   : > { %596 = vrcp.f32 %v398_v8  ;;  %v399_v11 = vadd.f32 1.0, %v585_v9 }
 0x107   : > { %598 = vrcp.f32 %v395_v10 }
 0x108   : > { %600 = vrcp.f32 %v399_v11 }
 0x10b   : > { %v587_v12 = vpop.eup %586 }
 0x10c   : > { %v589_v14 = vpop.eup %588  ;;  %v401_v15 = vmul.f32 %v587_v12, %v384_v13 }
 0x10d   : > { %v591_v17 = vpop.eup %590  ;;  %v409_v18 = vmul.f32 %v589_v14, %v388_v16 }
 0x10e   : > { %v593_v22 = vpop.eup %592  ;;  %v416_v23 = vmul.f32 %v401_v15, %v696_v20  ;;  %v403_v26 = vmul.f32 %v591_v17, %v385_v19 }
 0x10f   : > { %v420_v28 = vmul.f32 %v409_v18, %v698_v21  ;;  %v411_v29 = vmul.f32 %v593_v22, %v389_v27  ;;  %v595_v30 = vpop.eup %594 }
 0x110   : > { %424 = vst [vmem:[%s727_s16] sm:$0xff] %v416_v23  ;;  %v417_v31 = vmul.f32 %v403_v26, %v700_v24  ;;  %v597_v33 = vpop.eup %596  ;;  %v405_v34 = vmul.f32 %v595_v30, %v386_v32 }
 0x111   : > { %428 = vst [vmem:[%s727_s16 + $0x20] sm:$0xff] %v420_v28  ;;  %v421_v20 = vmul.f32 %v411_v29, %v702_v25  ;;  %v599_v21 = vpop.eup %598  ;;  %v413_v36 = vmul.f32 %v597_v33, %v390_v35  ;;  %v391_v25 = vsel %vm383_vm8, 1.0, %v585_v9 }
 0x112   : > { %425 = vst [vmem:[%s727_s16 + $0x8] sm:$0xff] %v417_v31  ;;  %v601_v24 = vpop.eup %600  ;;  %v418_v40 = vmul.f32 %v405_v34, %v708_v38  ;;  %v407_v41 = vmul.f32 %v599_v21, %v387_v37 }
 0x113   : > { %429 = vst [vmem:[%s727_s16 + $0x28] sm:$0xff] %v421_v20  ;;  %v422_v42 = vmul.f32 %v413_v36, %v710_v39  ;;  %v415_v43 = vmul.f32 %v601_v24, %v391_v25 }
 0x114   : > { %426 = vst [vmem:[%s727_s16 + $0x10] sm:$0xff] %v418_v40  ;;  %v419_v46 = vmul.f32 %v407_v41, %v712_v44 }
 0x115   : > { %430 = vst [vmem:[%s727_s16 + $0x30] sm:$0xff] %v422_v42  ;;  %v423_v47 = vmul.f32 %v415_v43, %v714_v45 }
 0x116   : > { %427 = vst [vmem:[%s727_s16 + $0x18] sm:$0xff] %v419_v46 }
 0x117   : > { %431 = vst [vmem:[%s727_s16 + $0x38] sm:$0xff] %v423_v47 }
 0x118 PF: > { %s13_s14 = sadd.s32 1, %s624_s14   ;;  %s763_s12 = smov %s620_s13 }
 0x119   : > { %p10_p5 = scmp.ge.s32.totalorder %s13_s14, 4   ;;  %s764_s13 = smov %s766_s15 }
 0x11b   :  { %12 = sbr.rel (!%p10_p5) target bundleno = 2 (0x2), region = 62 }

</bundles_post_ra>
